<compile_context>
chip_gen: v7x
topology: tpu7x:2x2x1
jax: 0.10.0
libtpu: 0.0.40
codegen_flags: <defaults>
</compile_context>

<pallas_src>
import functools

import jax
import jax.numpy as jnp
from jax.experimental import pallas as pl
from jax.experimental.pallas import tpu as pltpu

EPS = 1e-12
LANE = 128
SUBLANE = 8


def _layernorm(e, gamma, beta, mask, inv_h):
    """TF-style layernorm (epsilon inside the sqrt) over the last axis.

    `mask` is None when the hidden dim is unpadded (statistics over all lanes);
    otherwise only the first `true_h` lanes contribute to mean and variance.
    """
    if mask is None:
        u = jnp.sum(e, axis=-1, keepdims=True) * inv_h
        d = e - u
    else:
        u = jnp.sum(jnp.where(mask, e, 0.0), axis=-1, keepdims=True) * inv_h
        d = jnp.where(mask, e - u, 0.0)
    s = jnp.sum(d * d, axis=-1, keepdims=True) * inv_h
    # rsqrt -> EUP slot, co-issues for free alongside the VALU work.
    return gamma * (d * jax.lax.rsqrt(s + EPS)) + beta


def embeddings_kernel(x_ref, w_ref, bias_ref, gamma_ref, beta_ref, pos_ref,
                      o_ref, *, emb_norm, true_h):
    x = x_ref[...]                       # (tb, ts, F)   compute dtype (bf16)
    w = w_ref[...]                       # (F, Hp)       compute dtype, resident
    bias = bias_ref[...]                 # (1, Hp)  f32
    gamma = gamma_ref[...]               # (1, Hp)  f32
    beta = beta_ref[...]                 # (1, Hp)  f32
    pos = pos_ref[...]                   # (ts, Hp) f32

    tb, ts, f = x.shape
    hp = w.shape[1]

    # Statically skip the lane mask when the hidden dim is unpadded.
    mask = None
    if true_h != hp:
        mask = jax.lax.broadcasted_iota(jnp.int32, (1, 1, hp), 2) < true_h
    inv_h = jnp.float32(1.0 / true_h)

    # Linear: 2-D MXU matmul with f32 accumulation.  The leading-dim merges /
    # splits are layout no-ops (tb == 1, or ts a multiple of 16).
    e = jnp.dot(x.reshape(tb * ts, f), w, preferred_element_type=jnp.float32)
    e = e.reshape(tb, ts, hp) + bias

    if emb_norm:
        e = _layernorm(e, gamma, beta, mask, inv_h)

    # Positional embedding: (ts, Hp) broadcasts over the batch tile.
    e = e + pos

    e = _layernorm(e, gamma, beta, mask, inv_h)
    o_ref[...] = e.astype(o_ref.dtype)


def embeddings_forward(x, w, b, pos_embed, gamma, beta, *, emb_norm=True,
                       block_rows=512, compute_dtype=jnp.bfloat16):
    """x: (B, S, F), w: (F, H) (Linear weight, transposed), b/gamma/beta: (H,),
    pos_embed: (S, H).  Returns (B, S, H) float32."""
    B, S, F = x.shape
    H = w.shape[1]

    # ---- hidden-dim layout: lane-pad only when the inflation is small. ------
    pad_h = (-H) % LANE
    if pad_h and pad_h * 8 > H:          # > 12.5% extra HBM bytes: not worth it
        pad_h = 0
    Hp = H + pad_h

    # ---- tiling over (batch, seq): ~block_rows rows per grid step. ----------
    ts = S if S <= block_rows else block_rows      # mult of 8, or == full S
    tb = 1
    if S <= block_rows and S % 16 == 0:            # keep reshapes layout no-ops
        tb = max(1, min(B, block_rows // ts))
    n_s = pl.cdiv(S, ts)
    n_b = pl.cdiv(B, tb)
    if n_s * n_b < 2 and B > 1:                    # give both v7x TCs work
        tb = pl.cdiv(B, 2)
        n_b = pl.cdiv(B, tb)
    S_pad = n_s * ts
    B_pad = n_b * tb

    # ---- operand prep: bf16 for the MXU, f32 epilogue params. ---------------
    x_p = jnp.pad(x, ((0, B_pad - B), (0, S_pad - S), (0, 0))).astype(compute_dtype)
    w_p = jnp.pad(w, ((0, 0), (0, pad_h))).astype(compute_dtype)
    pos_p = jnp.pad(pos_embed, ((0, S_pad - S), (0, pad_h))).astype(jnp.float32)
    bias_p = jnp.pad(b.reshape(1, H), ((0, 0), (0, pad_h))).astype(jnp.float32)
    gamma_p = jnp.pad(gamma.reshape(1, H), ((0, 0), (0, pad_h))).astype(jnp.float32)
    beta_p = jnp.pad(beta.reshape(1, H), ((0, 0), (0, pad_h))).astype(jnp.float32)

    # ---- explicit VMEM budget (resident W + double-buffered tiles + temps). --
    cd = jnp.dtype(compute_dtype).itemsize
    est = (2 * (tb * ts * F * cd            # x tile
                + F * Hp * cd               # W (resident; conservatively x2)
                + ts * Hp * 4               # pos tile
                + 3 * Hp * 4                # bias/gamma/beta
                + tb * ts * Hp * 4)         # out tile
           + 4 * tb * ts * Hp * 4)          # in-kernel f32 temporaries
    vmem_limit = int(min(max(2 * est, 32 << 20), 128 << 20))

    kernel = functools.partial(embeddings_kernel, emb_norm=emb_norm, true_h=H)

    out = pl.pallas_call(
        kernel,
        out_shape=jax.ShapeDtypeStruct((B_pad, S_pad, Hp), jnp.float32),
        grid_spec=pl.GridSpec(
            # seq tiles outer / batch tiles inner: pos, W and the LayerNorm
            # params keep a constant block index across the inner loop, so the
            # pipeline elides their re-fetch (no batch-tiled pos stream).
            grid=(n_s, n_b),
            in_specs=[
                pl.BlockSpec((tb, ts, F), lambda j, k: (k, j, 0)),   # x rows
                pl.BlockSpec((F, Hp), lambda j, k: (0, 0)),          # W resident
                pl.BlockSpec((1, Hp), lambda j, k: (0, 0)),          # bias
                pl.BlockSpec((1, Hp), lambda j, k: (0, 0)),          # gamma
                pl.BlockSpec((1, Hp), lambda j, k: (0, 0)),          # beta
                pl.BlockSpec((ts, Hp), lambda j, k: (j, 0)),         # pos (S,Hp)
            ],
            out_specs=pl.BlockSpec((tb, ts, Hp), lambda j, k: (k, j, 0)),
        ),
        compiler_params=pltpu.CompilerParams(
            dimension_semantics=("parallel", "parallel"),
            vmem_limit_bytes=vmem_limit),
    )(x_p, w_p, bias_p, gamma_p, beta_p, pos_p)

    if B_pad != B or S_pad != S or Hp != H:
        out = out[:B, :S, :H]
    return out


def embeddings_ref(x, w, b, pos_embed, gamma, beta, *, emb_norm=True):
    def ln(e):
        u = jnp.mean(e, axis=-1, keepdims=True)
        s = jnp.mean((e - u) ** 2, axis=-1, keepdims=True)
        return gamma * ((e - u) / jnp.sqrt(s + EPS)) + beta

    e = jnp.einsum("bsf,fh->bsh", x, w) + b
    if emb_norm:
        e = ln(e)
    e = e + pos_embed[None, :, :]
    return ln(e)


if __name__ == "__main__":
    # cfg: feature_num=16, hidden=32, seq_len=8, emb_norm=True
    B, S, F, H = 2, 8, 16, 32

    key = jax.random.PRNGKey(0)
    kx, kw, kb, kp = jax.random.split(key, 4)

    x = jax.random.normal(kx, (B, S, F), dtype=jnp.float32)
    w = jax.random.normal(kw, (F, H), dtype=jnp.float32) * 0.02   # Linear weight (F, H)
    b = jax.random.normal(kb, (H,), dtype=jnp.float32) * 0.02     # Linear bias
    pos_embed = jax.random.normal(kp, (S, H), dtype=jnp.float32) * 0.02  # nn.Embedding table
    gamma = jnp.ones((H,), dtype=jnp.float32)                     # LayerNorm gamma
    beta = jnp.zeros((H,), dtype=jnp.float32)                     # LayerNorm beta

    out = embeddings_forward(x, w, b, pos_embed, gamma, beta, emb_norm=True)
    out = jax.block_until_ready(out)

    # Reference uses the same bf16-rounded operands the kernel feeds the MXU
    # (matmul accumulates in f32 on both sides; LayerNorm epilogue is f32).
    x_r = x.astype(jnp.bfloat16).astype(jnp.float32)
    w_r = w.astype(jnp.bfloat16).astype(jnp.float32)
    ref = embeddings_ref(x_r, w_r, b, pos_embed, gamma, beta, emb_norm=True)

    assert out.shape == (B, S, H)
    assert jnp.allclose(out, ref, atol=1e-4, rtol=1e-4), "mismatch vs reference"

    print("KERNEL_OK")
</pallas_src>

<mosaic_0001>
module attributes {stable_mosaic.version = 11 : i64} {
  func.func @embeddings_kernel(%arg0: i32, %arg1: i32, %arg2: memref<1x8x16xbf16, #tpu.memory_space<vmem>>, %arg3: memref<16x32xbf16, #tpu.memory_space<vmem>>, %arg4: memref<1x32xf32, #tpu.memory_space<vmem>>, %arg5: memref<1x32xf32, #tpu.memory_space<vmem>>, %arg6: memref<1x32xf32, #tpu.memory_space<vmem>>, %arg7: memref<8x32xf32, #tpu.memory_space<vmem>>, %arg8: memref<1x8x32xf32, #tpu.memory_space<vmem>>) attributes {dimension_semantics = [#tpu.dimension_semantics<parallel>, #tpu.dimension_semantics<parallel>], iteration_bounds = array<i64: 1, 2>, scalar_prefetch = 0 : i64, scratch_operands = 0 : i64, tpu.core_type = #tpu.core_type<tc>, window_params = [{transform_indices = @transform_0, window_bounds = array<i64: 1, 8, 16>}, {pipeline_mode = #tpu.pipeline_mode<synchronous>, transform_indices = @transform_1, window_bounds = array<i64: 16, 32>}, {pipeline_mode = #tpu.pipeline_mode<synchronous>, transform_indices = @transform_2, window_bounds = array<i64: 1, 32>}, {pipeline_mode = #tpu.pipeline_mode<synchronous>, transform_indices = @transform_3, window_bounds = array<i64: 1, 32>}, {pipeline_mode = #tpu.pipeline_mode<synchronous>, transform_indices = @transform_4, window_bounds = array<i64: 1, 32>}, {transform_indices = @transform_5, window_bounds = array<i64: 8, 32>}, {transform_indices = @transform_6, window_bounds = array<i64: 1, 8, 32>}]} {
    %c0 = arith.constant 0 : index
    %c0_0 = arith.constant 0 : index
    %c0_1 = arith.constant 0 : index
    %0 = vector.load %arg2[%c0, %c0_0, %c0_1] : memref<1x8x16xbf16, #tpu.memory_space<vmem>>, vector<1x8x16xbf16>
    %c0_2 = arith.constant 0 : index
    %c0_3 = arith.constant 0 : index
    %1 = vector.load %arg3[%c0_2, %c0_3] : memref<16x32xbf16, #tpu.memory_space<vmem>>, vector<16x32xbf16>
    %c0_4 = arith.constant 0 : index
    %c0_5 = arith.constant 0 : index
    %2 = vector.load %arg4[%c0_4, %c0_5] : memref<1x32xf32, #tpu.memory_space<vmem>>, vector<1x32xf32>
    %c0_6 = arith.constant 0 : index
    %c0_7 = arith.constant 0 : index
    %3 = vector.load %arg5[%c0_6, %c0_7] : memref<1x32xf32, #tpu.memory_space<vmem>>, vector<1x32xf32>
    %c0_8 = arith.constant 0 : index
    %c0_9 = arith.constant 0 : index
    %4 = vector.load %arg6[%c0_8, %c0_9] : memref<1x32xf32, #tpu.memory_space<vmem>>, vector<1x32xf32>
    %c0_10 = arith.constant 0 : index
    %c0_11 = arith.constant 0 : index
    %5 = vector.load %arg7[%c0_10, %c0_11] : memref<8x32xf32, #tpu.memory_space<vmem>>, vector<8x32xf32>
    %6 = vector.shape_cast %0 : vector<1x8x16xbf16> to vector<8x16xbf16>
    %cst = arith.constant dense<0.000000e+00> : vector<8x32xf32>
    %7 = tpu.matmul %6, %1, %cst {dimension_numbers = #tpu.dot_dimension_numbers<[1], [0], [0], [1], [0, 0, 1, 1], [], []>} : vector<8x16xbf16>, vector<16x32xbf16>, vector<8x32xf32> -> vector<8x32xf32>
    %8 = vector.shape_cast %7 : vector<8x32xf32> to vector<1x8x32xf32>
    %9 = vector.shape_cast %2 : vector<1x32xf32> to vector<1x1x32xf32>
    %10 = vector.broadcast %9 : vector<1x1x32xf32> to vector<1x8x32xf32>
    %11 = arith.addf %8, %10 : vector<1x8x32xf32>
    %cst_12 = arith.constant dense<0.000000e+00> : vector<1x8xf32>
    %12 = vector.multi_reduction <add>, %11, %cst_12 [2] : vector<1x8x32xf32> to vector<1x8xf32>
    %13 = vector.shape_cast %12 : vector<1x8xf32> to vector<1x8x1xf32>
    %cst_13 = arith.constant 3.125000e-02 : f32
    %14 = vector.broadcast %cst_13 : f32 to vector<1x8x1xf32>
    %15 = arith.mulf %13, %14 : vector<1x8x1xf32>
    %16 = vector.broadcast %15 : vector<1x8x1xf32> to vector<1x8x32xf32>
    %17 = arith.subf %11, %16 : vector<1x8x32xf32>
    %18 = arith.mulf %17, %17 : vector<1x8x32xf32>
    %cst_14 = arith.constant dense<0.000000e+00> : vector<1x8xf32>
    %19 = vector.multi_reduction <add>, %18, %cst_14 [2] : vector<1x8x32xf32> to vector<1x8xf32>
    %20 = vector.shape_cast %19 : vector<1x8xf32> to vector<1x8x1xf32>
    %cst_15 = arith.constant 3.125000e-02 : f32
    %21 = vector.broadcast %cst_15 : f32 to vector<1x8x1xf32>
    %22 = arith.mulf %20, %21 : vector<1x8x1xf32>
    %cst_16 = arith.constant 9.99999996E-13 : f32
    %23 = vector.broadcast %cst_16 : f32 to vector<1x8x1xf32>
    %24 = arith.addf %22, %23 : vector<1x8x1xf32>
    %25 = math.rsqrt %24 : vector<1x8x1xf32>
    %26 = vector.broadcast %25 : vector<1x8x1xf32> to vector<1x8x32xf32>
    %27 = arith.mulf %17, %26 : vector<1x8x32xf32>
    %28 = vector.shape_cast %3 : vector<1x32xf32> to vector<1x1x32xf32>
    %29 = vector.broadcast %28 : vector<1x1x32xf32> to vector<1x8x32xf32>
    %30 = arith.mulf %29, %27 : vector<1x8x32xf32>
    %31 = vector.shape_cast %4 : vector<1x32xf32> to vector<1x1x32xf32>
    %32 = vector.broadcast %31 : vector<1x1x32xf32> to vector<1x8x32xf32>
    %33 = arith.addf %30, %32 : vector<1x8x32xf32>
    %34 = vector.shape_cast %5 : vector<8x32xf32> to vector<1x8x32xf32>
    %35 = arith.addf %33, %34 : vector<1x8x32xf32>
    %cst_17 = arith.constant dense<0.000000e+00> : vector<1x8xf32>
    %36 = vector.multi_reduction <add>, %35, %cst_17 [2] : vector<1x8x32xf32> to vector<1x8xf32>
    %37 = vector.shape_cast %36 : vector<1x8xf32> to vector<1x8x1xf32>
    %cst_18 = arith.constant 3.125000e-02 : f32
    %38 = vector.broadcast %cst_18 : f32 to vector<1x8x1xf32>
    %39 = arith.mulf %37, %38 : vector<1x8x1xf32>
    %40 = vector.broadcast %39 : vector<1x8x1xf32> to vector<1x8x32xf32>
    %41 = arith.subf %35, %40 : vector<1x8x32xf32>
    %42 = arith.mulf %41, %41 : vector<1x8x32xf32>
    %cst_19 = arith.constant dense<0.000000e+00> : vector<1x8xf32>
    %43 = vector.multi_reduction <add>, %42, %cst_19 [2] : vector<1x8x32xf32> to vector<1x8xf32>
    %44 = vector.shape_cast %43 : vector<1x8xf32> to vector<1x8x1xf32>
    %cst_20 = arith.constant 3.125000e-02 : f32
    %45 = vector.broadcast %cst_20 : f32 to vector<1x8x1xf32>
    %46 = arith.mulf %44, %45 : vector<1x8x1xf32>
    %cst_21 = arith.constant 9.99999996E-13 : f32
    %47 = vector.broadcast %cst_21 : f32 to vector<1x8x1xf32>
    %48 = arith.addf %46, %47 : vector<1x8x1xf32>
    %49 = math.rsqrt %48 : vector<1x8x1xf32>
    %50 = vector.broadcast %49 : vector<1x8x1xf32> to vector<1x8x32xf32>
    %51 = arith.mulf %41, %50 : vector<1x8x32xf32>
    %52 = vector.shape_cast %3 : vector<1x32xf32> to vector<1x1x32xf32>
    %53 = vector.broadcast %52 : vector<1x1x32xf32> to vector<1x8x32xf32>
    %54 = arith.mulf %53, %51 : vector<1x8x32xf32>
    %55 = vector.shape_cast %4 : vector<1x32xf32> to vector<1x1x32xf32>
    %56 = vector.broadcast %55 : vector<1x1x32xf32> to vector<1x8x32xf32>
    %57 = arith.addf %54, %56 : vector<1x8x32xf32>
    %c0_22 = arith.constant 0 : index
    %c0_23 = arith.constant 0 : index
    %c0_24 = arith.constant 0 : index
    %58 = vector.load %arg8[%c0_22, %c0_23, %c0_24] : memref<1x8x32xf32, #tpu.memory_space<vmem>>, vector<1x8x32xf32>
    tpu.vector_store %arg8[%c0_22, %c0_23, %c0_24], %57 {strides = array<i32>} : memref<1x8x32xf32, #tpu.memory_space<vmem>>, vector<1x8x32xf32>,
    return
  }
  func.func @transform_0(%arg0: i32, %arg1: i32) -> (i32, i32, i32) {
    %c0_i32 = arith.constant 0 : i32
    %c0_i32_0 = arith.constant 0 : i32
    return %arg1, %arg0, %c0_i32 : i32, i32, i32
  }
  func.func @transform_1(%arg0: i32, %arg1: i32) -> (i32, i32) {
    %c0_i32 = arith.constant 0 : i32
    %c0_i32_0 = arith.constant 0 : i32
    %c0_i32_1 = arith.constant 0 : i32
    return %c0_i32, %c0_i32_0 : i32, i32
  }
  func.func @transform_2(%arg0: i32, %arg1: i32) -> (i32, i32) {
    %c0_i32 = arith.constant 0 : i32
    %c0_i32_0 = arith.constant 0 : i32
    %c0_i32_1 = arith.constant 0 : i32
    return %c0_i32, %c0_i32_0 : i32, i32
  }
  func.func @transform_3(%arg0: i32, %arg1: i32) -> (i32, i32) {
    %c0_i32 = arith.constant 0 : i32
    %c0_i32_0 = arith.constant 0 : i32
    %c0_i32_1 = arith.constant 0 : i32
    return %c0_i32, %c0_i32_0 : i32, i32
  }
  func.func @transform_4(%arg0: i32, %arg1: i32) -> (i32, i32) {
    %c0_i32 = arith.constant 0 : i32
    %c0_i32_0 = arith.constant 0 : i32
    %c0_i32_1 = arith.constant 0 : i32
    return %c0_i32, %c0_i32_0 : i32, i32
  }
  func.func @transform_5(%arg0: i32, %arg1: i32) -> (i32, i32) {
    %c0_i32 = arith.constant 0 : i32
    %c0_i32_0 = arith.constant 0 : i32
    return %arg0, %c0_i32 : i32, i32
  }
  func.func @transform_6(%arg0: i32, %arg1: i32) -> (i32, i32, i32) {
    %c0_i32 = arith.constant 0 : i32
    %c0_i32_0 = arith.constant 0 : i32
    return %arg1, %arg0, %c0_i32 : i32, i32, i32
  }
}

</mosaic_0001>

<bundles_post_ra>
// kernel: tpu_custom_call.1
= control target key start
LH: loop header
LB: loop body
LE: loop exit
PB: predicated region body
PF: predicated region fallthrough
CT: control target
= control target key end

     0   :  { %s1077_s0 = inlined_call_operand.hbm [shape: bf16[2,8,16], index: 0, kind: input, shape index: {}]   ;;  %s1078_s1 = inlined_call_operand.hbm [shape: bf16[16,32], index: 1, kind: input, shape index: {}]   ;;  %s1079_s2 = inlined_call_operand.vmem [shape: f32[1,32], index: 2, kind: input, shape index: {}]   ;;  %s1080_s3 = inlined_call_operand.vmem [shape: f32[1,32], index: 3, kind: input, shape index: {}]   ;;  %s1081_s4 = inlined_call_operand.vmem [shape: f32[1,32], index: 4, kind: input, shape index: {}]   ;;  %s1082_s5 = inlined_call_operand.vmem [shape: f32[8,32], index: 5, kind: input, shape index: {}]   ;;  %s1083_s6 = inlined_call_operand.hbm [shape: f32[2,8,32], index: 6, kind: output, shape index: {}]  }
   0x1   :  { %1088 = sst [smem:[#allocation11_spill]] %s1078_s1 }
   0x2   :  { %11 = vsyncpa [#allocation3], 0 }
   0x3   :  { %13 = vsyncpa [#allocation3 + $0x1], 0 }
   0x4   :  { %14 = vsyncpa [#allocation6], 0 }
   0x5   :  { %15 = vsyncpa [#allocation4], 0 }
   0x6   :  { %17 = vsyncpa [#allocation4 + $0x1], 0  ;;  %s845_s21 = smov 0   ;;  %s847_s22 = smov 0  }
   0x7   :  { %s849_s23 = smov 0   ;;  %s851_s24 = smov 0  }
   0x8   :  { %s853_s25 = smov 0   ;;  %s855_s26 = smov 0  }
   0x9 LB: > { %s546_s27 = sadd.s32 4294967295, %s801_s26   ;;  %s547_s28 = sadd.s32 4294967294, %s801_s26   ;;  %s801_s26 = sphi %s855_s26, %s23_s26   ;;  %s797_s25 = sphi %s853_s25, %s1109_s25   ;;  %s793_s24 = sphi %s851_s24, %s1108_s24   ;;  %s789_s23 = sphi %s849_s23, %s1107_s23   ;;  %s785_s22 = sphi %s847_s22, %s1106_s22   ;;  %s781_s21 = sphi %s845_s21, %s1105_s21  }
   0xa   : > { %p57_p0 = scmp.ne.s32.totalorder %s785_s22, %s781_s21  ;;  %p879_p1 = scmp.eq.s32.totalorder %s546_s27, 0 }
   0xb   : > { %p883_p2 = scmp.eq.s32.totalorder %s546_s27, 1  ;;  %p199_p3 = scmp.eq.s32.totalorder %s547_s28, 1 }
   0xc   : > { %s1089_s29 = scalar_select %p879_p1, 1, 0 }
   0xd   : > { %s1090_s30 = scalar_select %p883_p2, 1, 0 }
   0xe   : > { %p889_p4 = por %p879_p1, %p57_p0  ;;  %p548_p5 = scmp.ge.s32.totalorder %s801_s26, 1 }
   0xf   : > { %p894_p6 = por %p199_p3, %p57_p0  ;;  %p206_p7 = scmp.lt.s32.totalorder %s801_s26, 3 }
  0x10   : > { %s1091_s7 = scalar_select %p889_p4, 1, 0 }
  0x11   : > { %s1092_s8 = scalar_select %p894_p6, 1, 0 }
  0x12   : > { %p899_p8 = pnand %p548_p5, %p206_p7  ;;  %s803_s10 = smov [#allocation5]  }
  0x13   : > { %s218_s11 = sshll.u32 %s803_s10, 4  ;;  %s32_s13 = sadd.s32 1, %s797_s25  ;;  %s219_s11 = int_to_ptr.vmem [resolvable:$true] %s218_s11 }
  0x14   : > { %s1093_s9 = scalar_select %p899_p8, 1, 0 }
  0x15   : > { %p583_p9 = pneg %p899_p8  ;;  %s1095_s1 = sld [smem:[#allocation11_spill]] }
  0x17   : > { %p908_p11 = pnand %p583_p9, %p879_p1 }
  0x19   : > { %p659_p13 = pneg %p908_p11 }
  0x1b   : > { %s657_s16 = scalar_lea.hbm %s1095_s1, 128 }
  0x1c   : > { %p658_p12 = scmp.ne.s32.totalorder %s1095_s1, %s657_s16  ;;  %p664_p5 = scmp.lt.u32.totalorder %s657_s16, %s1095_s1 }
  0x1e   : > { %p660_p0 = pnand %p659_p13, %p658_p12 }
  0x20   : > { %p661_p3 = pneg %p660_p0 }
  0x22   : > { %p666_p7 = pnand %p664_p5, %p661_p3 }
  0x24   : > { %669 = shalt.err (!%p666_p7)
}
  0x25   : > { %s670_s27 = scalar_lea.vmem %s219_s11, 128  ;;  %p678_p1 = scmp.lt.s32.totalorder %s219_s11, %s219_s11 }
  0x26   : > { %p671_p9 = scmp.ne.s32.totalorder %s219_s11, %s670_s27  ;;  %p679_p4 = scmp.lt.s32.totalorder %s670_s27, %s670_s27 }
  0x28   : > { %p673_p10 = pnand %p671_p9, %p659_p13  ;;  %p680_p8 = por %p679_p4, %p678_p1 }
  0x2a   : > { %p674_p6 = pneg %p673_p10 }
  0x2c   : > { %p681_p2 = pnand %p680_p8, %p674_p6 }
  0x2e   : > { %684 = shalt.err (!%p681_p2)
}
  0x2f   : > { %s804_s28 = smov 64   ;;  %s805_s10 = smov 4  }
  0x30   : > { %586 = dma.hbm_to_vmem [thread:$0]  (!%p908_p11), %s1095_s1, 128, %s219_s11, [#allocation6], %s804_s28, %s804_s28, %s805_s10  }
  0x31   : > { %p33_p1 = scmp.ge.s32.totalorder %s32_s13, 2  ;;  %s44_s16 = sadd.s32 1, %s789_s23 }
  0x32   : > { %p51_p2 = scmp.ne.s32.totalorder %s789_s23, %s785_s22  ;;  %p52_p4 = scmp.eq.s32.totalorder %s801_s26, 0 }
  0x33   : > { %s1111_s13 = smov (%p33_p1, %s32_s13), 0  ;;  %p1097_p8 = scmp.ne.s32.totalorder %s1090_s30, 0 }
  0x34   : > { %p935_p6 = por %p52_p4, %p51_p2  ;;  %s39_s12 = ssub.s32 %s797_s25, %s1111_s13 }
  0x35   : > { %p941_p10 = por %p1097_p8, %p51_p2  ;;  %p596_p12 = scmp.lt.s32.totalorder %s801_s26, 2 }
  0x36   : > { %p42_p11 = scmp.eq.s32.totalorder %s39_s12, 0  ;;  %s248_s11 = sand.u32 1, %s789_s23  }
  0x37   : > { %s552_s19 = sshll.u32 %s248_s11, 2  ;;  %s553_s27 = sshll.u32 %s797_s25, 6 }
  0x38   : > { %s950_s20 = scalar_select %p42_p11, %s789_s23, %s44_s16  }
  0x39   : > { %s956_s14 = scalar_lea.hbm %s1077_s0, %s553_s27  ;;  %s252_s30 = scalar_lea.vmem [#allocation2], %s552_s19 }
  0x3a   : > { %s260_s15 = sshll.u32 %s252_s30, 4  ;;  %p962_p13 = pnand %p596_p12, %p935_p6  ;;  %s958_s15 = int_to_ptr.vmem [resolvable:$true] %s260_s15 }
  0x3b   : > { %s249_s16 = scalar_lea.sflag [#allocation3], %s248_s11  ;;  %s685_s1 = scalar_lea.hbm %s956_s14, 64 }
  0x3c   : > { %p686_p0 = scmp.ne.s32.totalorder %s956_s14, %s685_s1  ;;  %p687_p3 = pneg %p962_p13 }
  0x3d   : > { %s690_s28 = scalar_lea.hbm %s1077_s0, 128  ;;  %p691_p9 = scmp.lt.u32.totalorder %s956_s14, %s1077_s0 }
  0x3e   : > { %p688_p5 = pnand %p687_p3, %p686_p0  ;;  %p692_p1 = scmp.lt.u32.totalorder %s690_s28, %s685_s1 }
  0x3f   : > { %p694_p4 = scmp.lt.u32.totalorder %s685_s1, %s956_s14 }
  0x40   : > { %p689_p7 = pneg %p688_p5  ;;  %p693_p2 = por %p692_p1, %p691_p9 }
  0x42   : > { %p695_p6 = por %p694_p4, %p693_p2 }
  0x44   : > { %p696_p8 = pnand %p695_p6, %p689_p7 }
  0x46   : > { %699 = shalt.err (!%p696_p8)
}
  0x47   : > { %s700_s11 = scalar_lea.vmem %s958_s15, 64  ;;  %s806_s30 = smov [#allocation2]  }
  0x48   : > { %p701_p12 = scmp.ne.s32.totalorder %s958_s15, %s700_s11  ;;  %s705_s19 = sshll.u32 %s806_s30, 4  ;;  %s706_s19 = int_to_ptr.vmem [resolvable:$false] %s705_s19 }
  0x49   : > { %s707_s27 = scalar_lea.vmem %s706_s19, 128  ;;  %p708_p5 = scmp.lt.s32.totalorder %s958_s15, %s706_s19 }
  0x4a   : > { %p703_p11 = pnand %p701_p12, %p687_p3  ;;  %p709_p9 = scmp.lt.s32.totalorder %s707_s27, %s700_s11 }
  0x4c   : > { %p704_p0 = pneg %p703_p11  ;;  %p710_p1 = por %p709_p9, %p708_p5 }
  0x4e   : > { %p711_p2 = pnand %p710_p1, %p704_p0 }
  0x50   : > { %714 = shalt.err (!%p711_p2)
}
  0x51   : > { %590 = dma.hbm_to_vmem [thread:$0]  (!%p962_p13), %s956_s14, 64, %s958_s15, %s249_s16  }
  0x52   : > { %p1100_p7 = scmp.ne.s32.totalorder %s1093_s9, 0 }
  0x53   : > { %s994_s1 = sand.u32 (!%p1100_p7), 1, %s785_s22   ;;  %p1101_p3 = scmp.ne.s32.totalorder (!%p1100_p7), %s1091_s7, 0 }
  0x54   : > { %269 = sbr.rel (%p1100_p7) target bundleno = 956 (0x3bc), region = 44  ;;  %s555_s28 = sshll.u32 (!%p1100_p7), %s994_s1, 2 }
  0x55   : > { %s272_s17 = scalar_lea.sflag (!%p1100_p7), [#allocation3], %s994_s1  ;;  %s275_s10 = scalar_lea.vmem (!%p1100_p7), [#allocation2], %s555_s28 }
  0x5b   : > { %768 = dma.done.wait (%p1101_p3), %s272_s17, 64  }
  0x5c   : > { %770 = vsyncadd (%p1101_p3), %s272_s17, 4294967232  ;;  %p1102_p4 = scmp.ne.s32.totalorder %s1089_s29, 0 }
  0x5e   : > { %772 = dma.done.wait (%p1102_p4), [#allocation6], 128  }
  0x5f   : > { %774 = vsyncadd (%p1102_p4), [#allocation6], 4294967168  ;;  %v807_v0 = vmov 0.0   ;;  %vm808_vm0 = vmmov 0   ;;  %v652_v1 = vld [vmem:[#allocation5] sm:$0xff]   ;;  %vm330_vm1 = vcmask 130048  }
  0x60   : > { %569 = vmatprep.subr.bf16.mxu0 %v807_v0  ;;  %571 = vmatprep.mubr.msk.bf16.mxu0 %vm808_vm0, %v807_v0  ;;  %v317_v2 = vld [vmem:[%s275_s10] sm:$0xf]  ;;  %vm381_vm2 = vcmask 261120   ;;  %s557_s30 = sshll.u32 %s994_s1, 3  ;;  %s564_s19 = sshll.u32 %s793_s24, 7 }
  0x61   : > { %570 = vmatpush3.bf16.msra.mxu0 %v652_v1  ;;  %v560_v3 = vld [vmem:[%s1079_s2] ss:$0 sm:$0xff]  ;;  %s311_s27 = scalar_lea.vmem [#allocation7], %s557_s30  ;;  %s1027_s9 = scalar_lea.hbm %s1083_s6, %s564_s19 }
  0x62   : > { %v561_v19 = vld [vmem:[%s1080_s3] ss:$0 sm:$0xff]  ;;  %s441_s28 = sshll.u32 %s311_s27, 4  ;;  %s427_s14 = scalar_lea.sflag [#allocation4], %s994_s1  ;;  %s1029_s28 = int_to_ptr.vmem [resolvable:$true] %s441_s28 }
  0x63   : > { %v562_v21 = vld [vmem:[%s1081_s4] ss:$0 sm:$0xff]  ;;  %s715_s29 = scalar_lea.vmem %s1029_s28, 128  ;;  %s809_s24 = smov [#allocation7]  }
  0x64   : > { %572 = vmatmul.mubr.msk.bf16.vlgmr.msra.gmra.mrb[0].mxu0 %vm330_vm1, %v317_v2  ;;  %v323_v23 = vld [vmem:[%s1082_s5] sm:$0xff]  ;;  %p716_p13 = scmp.ne.s32.totalorder %s1029_s28, %s715_s29  ;;  %s719_s7 = sshll.u32 %s809_s24, 4  ;;  %s720_s7 = int_to_ptr.vmem [resolvable:$false] %s719_s7 }
  0x65   : > { %s721_s15 = scalar_lea.vmem %s720_s7, 256  ;;  %p722_p12 = scmp.lt.s32.totalorder %s1029_s28, %s720_s7 }
  0x66   : > { %p717_p6 = pnand %p716_p13, %p941_p10  ;;  %p723_p11 = scmp.lt.s32.totalorder %s721_s15, %s715_s29 }
  0x68   : > { %p718_p8 = pneg %p717_p6  ;;  %p724_p0 = por %p723_p11, %p722_p12 }
  0x6a   : > { %p725_p5 = pnand %p724_p0, %p718_p8 }
 0x137   : > { %v368_v4 = vpop.f32.mrb[0].mxu0 }
 0x138   : > { %v380_v5 = vadd.f32 %v560_v3, %v368_v4  ;;  %v573_v6 = vpop.f32.mrb[1].mxu0 }
 0x139   : > { %v371_v7 = vpop.f32.mrb[2].mxu0 }
 0x13a   : > { %v574_v8 = vpop.f32.mrb[3].mxu0  ;;  %v382_v9 = vsel %vm381_vm2, %v380_v5, 0.0 }
 0x13b   : > { %383 = vadd.xlane.f32.xlu0 %v382_v9 }
 0x1c8   : > { %v384_v10 = vpop.xlane.xlu0 %383 }
 0x1c9   : > { %v385_v11 = vmul.f32 0.03125, %v384_v10 }
 0x1cb   : > { %v386_v12 = vsub.f32 %v380_v5, %v385_v11 }
 0x1cd   : > { %v387_v13 = vmul.f32 %v386_v12, %v386_v12 }
 0x1cf   : > { %v388_v14 = vsel %vm381_vm2, %v387_v13, 0.0 }
 0x1d0   : > { %389 = vadd.xlane.f32.xlu0 %v388_v14 }
 0x25d   : > { %v390_v15 = vpop.xlane.xlu0 %389 }
 0x25e   : > { %v391_v16 = vmul.f32 0.03125, %v390_v15 }
 0x260   : > { %v392_v17 = vadd.f32 1e-12, %v391_v16 }
 0x262   : > { %653 = vrsqrt.f32 %v392_v17 }
 0x26c   : > { %v654_v18 = vpop.eup %653 }
 0x26d   : > { %v394_v20 = vmul.f32 %v654_v18, %v386_v12 }
 0x26f   : > { %v401_v22 = vmul.f32 %v561_v19, %v394_v20 }
 0x271   : > { %v408_v24 = vadd.f32 %v562_v21, %v401_v22 }
 0x273   : > { %v409_v25 = vadd.f32 %v408_v24, %v323_v23 }
 0x275   : > { %v410_v26 = vsel %vm381_vm2, %v409_v25, 0.0 }
 0x276   : > { %411 = vadd.xlane.f32.xlu1 %v410_v26 }
 0x303   : > { %v412_v27 = vpop.xlane.xlu1 %411 }
 0x304   : > { %v413_v28 = vmul.f32 0.03125, %v412_v27 }
 0x306   : > { %v414_v29 = vsub.f32 %v409_v25, %v413_v28 }
 0x308   : > { %v415_v30 = vmul.f32 %v414_v29, %v414_v29 }
 0x30a   : > { %v416_v31 = vsel %vm381_vm2, %v415_v30, 0.0 }
 0x30b   : > { %417 = vadd.xlane.f32.xlu1 %v416_v31 }
 0x398   : > { %v418_v32 = vpop.xlane.xlu1 %417 }
 0x399   : > { %v419_v33 = vmul.f32 0.03125, %v418_v32 }
 0x39b   : > { %v420_v34 = vadd.f32 1e-12, %v419_v33 }
 0x39d   : > { %655 = vrsqrt.f32 %v420_v34 }
 0x3a7   : > { %v656_v35 = vpop.eup %655 }
 0x3a8   : > { %v422_v36 = vmul.f32 %v656_v35, %v414_v29 }
 0x3aa   : > { %v423_v37 = vmul.f32 %v561_v19, %v422_v36 }
 0x3ac   : > { %v424_v38 = vadd.f32 %v562_v21, %v423_v37 }
 0x3ae   : > { %425 = vst.msk [vmem:[%s311_s27] sm:$0xff] %vm381_vm2, %v424_v38 }
 0x3af   : > { %728 = shalt.err (!%p725_p5)
}
 0x3b0   : > { %s729_s1 = scalar_lea.hbm %s1027_s9, 128  ;;  %s733_s11 = scalar_lea.hbm %s1083_s6, 256 }
 0x3b1   : > { %p730_p9 = scmp.ne.s32.totalorder %s1027_s9, %s729_s1  ;;  %p734_p7 = scmp.lt.u32.totalorder %s1027_s9, %s1083_s6 }
 0x3b2   : > { %p735_p3 = scmp.lt.u32.totalorder %s733_s11, %s729_s1  ;;  %p737_p13 = scmp.lt.u32.totalorder %s729_s1, %s1027_s9 }
 0x3b3   : > { %p731_p1 = pnand %p730_p9, %p941_p10 }
 0x3b4   : > { %p736_p4 = por %p735_p3, %p734_p7 }
 0x3b5   : > { %p732_p2 = pneg %p731_p1 }
 0x3b6   : > { %p738_p6 = por %p737_p13, %p736_p4 }
 0x3b8   : > { %p739_p8 = pnand %p738_p6, %p732_p2 }
 0x3ba   : > { %742 = shalt.err (!%p739_p8)
}
 0x3bb   : > { %581 = dma.vmem_to_hbm [thread:$0]  (%p941_p10), %s1029_s28, 128, %s1027_s9, %s427_s14  }
 0x3bc PF: > { %s453_s27 = sand.u32 1, %s781_s21   ;;  %p1103_p12 = scmp.ne.s32.totalorder %s1092_s8, 0 }
 0x3bd   : > { %p1104_p11 = scmp.ge.s32.totalorder %s801_s26, 2  ;;  %s454_s17 = scalar_lea.sflag [#allocation4], %s453_s27 }
 0x3bf   : > { %p592_p0 = pnand %p1104_p11, %p1103_p12 }
 0x3c1   : > { %776 = dma.done.wait (!%p592_p0), %s454_s17, 128  }
 0x3c2   : > { %778 = vsyncadd (!%p592_p0), %s454_s17, 4294967168  ;;  %s23_s26 = sadd.s32 1, %s801_s26   ;;  %s1105_s21 = smov %s785_s22 }
 0x3c3   : > { %p20_p5 = scmp.ge.s32.totalorder %s23_s26, 4   ;;  %s1106_s22 = smov %s789_s23 }
 0x3c4   : > { %s1107_s23 = smov %s950_s20  ;;  %s1108_s24 = smov %s797_s25 }
 0x3c5   : > { %s1109_s25 = smov %s1111_s13  ;;  %22 = sbr.rel (!%p20_p5) target bundleno = 9 (0x9), region = 96 }
 0x3cc   :  { %459 = vsyncpa [#allocation3], 1 }
 0x3cd   :  { %461 = vsyncpa [#allocation3 + $0x1], 1 }
 0x3ce   :  { %462 = vsyncpa [#allocation6], 1 }
 0x3cf   :  { %463 = vsyncpa [#allocation4], 1 }
 0x3d0   :  { %465 = vsyncpa [#allocation4 + $0x1], 1 }

</bundles_post_ra>
